<compile_context>
chip_gen: v6e
topology: v6e:2x2x1
jax: 0.10.0
libtpu: 0.0.40
codegen_flags: <defaults>
</compile_context>

<pallas_src>
import jax
import jax.numpy as jnp
from jax.experimental import pallas as pl
from jax.experimental.pallas import tpu as pltpu


def _vmem_capacity_bytes():
    """Physical per-core VMEM capacity; conservative default if unqueryable."""
    try:
        return int(pltpu.get_tpu_info().vmem_capacity_bytes)
    except Exception:
        return 64 * 1024 * 1024  # v7x per-TensorCore VMEM (smallest current gen)


def _largest_divisor_leq(n, cap):
    n = int(n)
    cap = max(1, min(n, int(cap)))
    for d in range(cap, 0, -1):
        if n % d == 0:
            return d
    return 1


# ----------------------------- single-pass kernel -----------------------------

def _se_gate_kernel(x_ref, w1_ref, b1_ref, w2_ref, b2_ref, o_ref):
    """Fused pool -> MLP -> gate for one (Nb, C, HW) block.

    x_ref/o_ref : (Nb, C, HW) in the input dtype.
    w1_ref      : (hidden, C) f32   (linear_1.weight, PyTorch layout)
    b1_ref      : (1, hidden) f32
    w2_ref      : (C, hidden) f32   (linear_2.weight, PyTorch layout)
    b2_ref      : (1, C)      f32
    """
    inv_hw = 1.0 / x_ref.shape[-1]
    # Global average pool (cross-lane reduce), f32 accumulation.
    pooled = jnp.sum(x_ref[...], axis=-1, dtype=jnp.float32) * inv_hw   # (Nb, C)

    # Squeeze: h[b, j] = relu(sum_c pooled[b, c] * W1[j, c] + b1[j])
    # Tiny batched "einsum" done as VPU broadcast-multiply + lane reduce.
    h = jnp.sum(pooled[:, None, :] * w1_ref[...][None, :, :], axis=-1)  # (Nb, hidden)
    h = jnp.maximum(h + b1_ref[...], 0.0)

    # Excite: g[b, c] = sum_j h[b, j] * W2[c, j] + b2[c]
    g = jnp.sum(h[:, None, :] * w2_ref[...][None, :, :], axis=-1)       # (Nb, C)
    gate = jax.nn.sigmoid(g + b2_ref[...])[:, :, None]                  # (Nb, C, 1) f32

    # Re-index x (cheap re-load from the resident VMEM block), multiply in f32
    # for dtype parity, cast once to the output dtype.
    o_ref[...] = (x_ref[...].astype(jnp.float32) * gate).astype(o_ref.dtype)


# ----------------------------- two-pass fallback ------------------------------

def _pool_sum_kernel(x_ref, s_ref):
    # x_ref: (1, tc, HW); s_ref: (1, tc, 1) f32 -- spatial sum in f32.
    s_ref[...] = jnp.sum(x_ref[...], axis=-1, keepdims=True, dtype=jnp.float32)


def _scale_kernel(x_ref, gate_ref, o_ref):
    # x_ref/o_ref: (1, tc, HW); gate_ref: (1, tc, 1) f32.
    o_ref[...] = (x_ref[...].astype(jnp.float32) * gate_ref[...]).astype(o_ref.dtype)


def _spatial_gate_two_pass(x_flat, w1_f32, b1_f32, w2_f32, b2_f32, budget, *,
                           donate_x=False):
    """Fallback when one (C, HW) slab cannot stay VMEM-resident:
    streaming pool kernel (channel-tiled) -> tiny MLP in plain JAX ->
    channel-tiled elementwise scale kernel."""
    N, C, HW = x_flat.shape
    itemsize = x_flat.dtype.itemsize
    headroom = 4 << 20

    # Channel tile: a multiple of 8 dividing C (or C itself); prefer blocks of
    # <= ~4 MiB that keep in+out double-buffering within the budget.
    cands = [d for d in range(8, C + 1, 8) if C % d == 0]
    if C not in cands:
        cands.append(C)

    def blk(tc):
        return tc * HW * itemsize

    fitting = [tc for tc in cands if 4 * blk(tc) + headroom <= budget]
    if fitting:
        pref = [tc for tc in fitting if blk(tc) <= (4 << 20)]
        tc = max(pref) if pref else min(fitting)
    else:
        # TODO(synk): HW too large for even an 8-channel tile; masked HW tiling
        # would be needed.  Use the smallest channel tile and accept spills.
        tc = min(cands)
    vmem_limit = int(min(budget, max(4 * blk(tc) + headroom, 16 << 20)))

    grid = (N, C // tc)
    cparams = pltpu.CompilerParams(dimension_semantics=("parallel", "parallel"),
                                   vmem_limit_bytes=vmem_limit)

    # Pass 1: spatial sums (f32 accumulation).
    sums = pl.pallas_call(
        _pool_sum_kernel,
        out_shape=jax.ShapeDtypeStruct((N, C, 1), jnp.float32),
        grid_spec=pltpu.PrefetchScalarGridSpec(
            num_scalar_prefetch=0,
            grid=grid,
            in_specs=[pl.BlockSpec((1, tc, HW), lambda n, c: (n, c, 0))],
            out_specs=pl.BlockSpec((1, tc, 1), lambda n, c: (n, c, 0)),
        ),
        compiler_params=cparams,
        cost_estimate=pl.CostEstimate(flops=N * C * HW, transcendentals=0,
                                      bytes_accessed=N * C * HW * itemsize),
    )(x_flat)

    # Tiny excitation MLP in plain JAX (negligible work, all f32).
    pooled = sums[:, :, 0] * (1.0 / HW)                                  # (N, C)
    h = jnp.maximum(pooled @ w1_f32.T + b1_f32, 0.0)                     # (N, hidden)
    g = jax.nn.sigmoid(h @ w2_f32.T + b2_f32)                            # (N, C)
    gate = g[:, :, None]                                                 # (N, C, 1)

    # Pass 2: per-channel gating, streamed over (batch, channel tiles).
    return pl.pallas_call(
        _scale_kernel,
        out_shape=jax.ShapeDtypeStruct((N, C, HW), x_flat.dtype),
        grid_spec=pltpu.PrefetchScalarGridSpec(
            num_scalar_prefetch=0,
            grid=grid,
            in_specs=[pl.BlockSpec((1, tc, HW), lambda n, c: (n, c, 0)),
                      pl.BlockSpec((1, tc, 1), lambda n, c: (n, c, 0))],
            out_specs=pl.BlockSpec((1, tc, HW), lambda n, c: (n, c, 0)),
        ),
        compiler_params=cparams,
        cost_estimate=pl.CostEstimate(flops=N * C * HW, transcendentals=0,
                                      bytes_accessed=2 * N * C * HW * itemsize),
        input_output_aliases=({0: 0} if donate_x else {}),
    )(x_flat, gate)


# --------------------------------- wrapper ------------------------------------

def spatial_gate_2d(x_nchw, w1, b1, w2, b2, *, donate_x=False, force_two_pass=False):
    """SpatialGate2d forward.

    x_nchw: (N, C, H, W)
    w1:     (hidden, C)  == linear_1.weight (PyTorch layout)
    b1:     (hidden,)    == linear_1.bias
    w2:     (C, hidden)  == linear_2.weight (PyTorch layout)
    b2:     (C,)         == linear_2.bias
    donate_x:        alias x's HBM buffer to the output (only if the caller
                     does not reuse x afterwards).
    force_two_pass:  force the pool -> MLP -> scale fallback path.
    """
    N, C, H, W = x_nchw.shape
    hidden = w1.shape[0]
    HW = H * W

    x_flat = x_nchw.reshape(N, C, HW)        # free reshape, no HBM transpose
    itemsize = x_flat.dtype.itemsize

    # Params cast to f32 once here (hoisted), not per grid step in the kernel.
    w1_f32 = w1.astype(jnp.float32)                      # (hidden, C)
    b1_f32 = b1.astype(jnp.float32).reshape(1, hidden)   # (1, hidden)
    w2_f32 = w2.astype(jnp.float32)                      # (C, hidden)
    b2_f32 = b2.astype(jnp.float32).reshape(1, C)        # (1, C)

    # Per-generation VMEM budget: 85% of physical capacity (~54 MiB on v7x,
    # ~109 MiB on v5e/v6e) leaves headroom for Mosaic scratch / semaphores.
    budget = int(_vmem_capacity_bytes() * 0.85)

    block_bytes = C * HW * itemsize                        # one (C, HW) slab
    weight_bytes = 4 * int(w1_f32.size + b1_f32.size + w2_f32.size + b2_f32.size)
    headroom = 4 << 20                                     # Mosaic internal scratch
    fixed_bytes = 2 * weight_bytes + headroom              # weights double-buffered
    per_batch_bytes = 4 * block_bytes                      # in + out, double-buffered

    if force_two_pass or per_batch_bytes + fixed_bytes > budget:
        out = _spatial_gate_two_pass(x_flat, w1_f32, b1_f32, w2_f32, b2_f32,
                                     budget, donate_x=donate_x)
        return out.reshape(N, C, H, W)

    # ---- single-pass: fused pool + MLP + gate, Nb batch elements per step ----
    target_step_bytes = 4 << 20                  # ~2-4 MiB/step -> near HBM roofline
    nb_by_target = max(1, target_step_bytes // block_bytes)
    nb_by_vmem = max(1, (budget - fixed_bytes) // per_batch_bytes)
    nb_by_mlp = max(1, (1 << 20) // max(1, 4 * C * hidden))   # cap VPU MLP temps
    nb_by_grid = max(1, N // 4)                  # >=4 grid steps when possible (v7x: 2 TCs)
    nb = _largest_divisor_leq(N, min(nb_by_target, nb_by_vmem, nb_by_mlp, nb_by_grid))

    vmem_limit = int(min(budget, max(nb * per_batch_bytes + fixed_bytes, 16 << 20)))

    cost = pl.CostEstimate(
        flops=2 * N * C * HW + 4 * N * C * hidden,
        transcendentals=N * C,
        bytes_accessed=2 * N * C * HW * itemsize + weight_bytes,
    )

    out = pl.pallas_call(
        _se_gate_kernel,
        out_shape=jax.ShapeDtypeStruct((N, C, HW), x_flat.dtype),
        grid_spec=pltpu.PrefetchScalarGridSpec(
            num_scalar_prefetch=0,
            grid=(N // nb,),
            in_specs=[
                pl.BlockSpec((nb, C, HW), lambda n: (n, 0, 0)),    # x (batch pack)
                pl.BlockSpec((hidden, C), lambda n: (0, 0)),       # W1 (f32)
                pl.BlockSpec((1, hidden), lambda n: (0, 0)),       # b1 (f32)
                pl.BlockSpec((C, hidden), lambda n: (0, 0)),       # W2 (f32)
                pl.BlockSpec((1, C), lambda n: (0, 0)),            # b2 (f32)
            ],
            out_specs=pl.BlockSpec((nb, C, HW), lambda n: (n, 0, 0)),
        ),
        compiler_params=pltpu.CompilerParams(
            dimension_semantics=("parallel",),
            vmem_limit_bytes=vmem_limit,
        ),
        cost_estimate=cost,
        input_output_aliases=({0: 0} if donate_x else {}),
    )(x_flat, w1_f32, b1_f32, w2_f32, b2_f32)

    return out.reshape(N, C, H, W)


def _reference(x, w1, b1, w2, b2):
    N, C, H, W = x.shape
    pooled = x.reshape(N, C, H * W).mean(-1)                 # (N, C)
    h = jnp.maximum(pooled @ w1.T + b1, 0.0)                 # (N, hidden)
    g = jax.nn.sigmoid(h @ w2.T + b2)                        # (N, C)
    return x * g[:, :, None, None]


if __name__ == "__main__":
    # Small shapes consistent with the module: in_ch=32, r=16 -> hidden=2.
    N, C, H, W = 2, 32, 16, 16
    r = 16
    hidden = C // r

    key = jax.random.PRNGKey(0)
    kx, kw1, kb1, kw2, kb2 = jax.random.split(key, 5)
    x = jax.random.normal(kx, (N, C, H, W), jnp.float32)
    w1 = jax.random.normal(kw1, (hidden, C), jnp.float32) * 0.1   # linear_1.weight
    b1 = jax.random.normal(kb1, (hidden,), jnp.float32) * 0.1     # linear_1.bias
    w2 = jax.random.normal(kw2, (C, hidden), jnp.float32) * 0.1   # linear_2.weight
    b2 = jax.random.normal(kb2, (C,), jnp.float32) * 0.1          # linear_2.bias

    ref = _reference(x, w1, b1, w2, b2)

    # Single-pass (fused) path.
    out = jax.block_until_ready(spatial_gate_2d(x, w1, b1, w2, b2))
    assert out.shape == ref.shape == (N, C, H, W)
    assert jnp.allclose(out, ref, atol=1e-5, rtol=1e-5)

    # Two-pass (pool -> MLP -> scale) fallback path.
    out2 = jax.block_until_ready(
        spatial_gate_2d(x, w1, b1, w2, b2, force_two_pass=True))
    assert out2.shape == ref.shape
    assert jnp.allclose(out2, ref, atol=1e-5, rtol=1e-5)

    print("KERNEL_OK")
</pallas_src>

<mosaic_0001>
module attributes {stable_mosaic.version = 11 : i64} {
  func.func @_se_gate_kernel(%arg0: i32, %arg1: memref<1x32x256xf32, #tpu.memory_space<vmem>>, %arg2: memref<2x32xf32, #tpu.memory_space<vmem>>, %arg3: memref<1x2xf32, #tpu.memory_space<vmem>>, %arg4: memref<32x2xf32, #tpu.memory_space<vmem>>, %arg5: memref<1x32xf32, #tpu.memory_space<vmem>>, %arg6: memref<1x32x256xf32, #tpu.memory_space<vmem>>) attributes {dimension_semantics = [#tpu.dimension_semantics<parallel>], iteration_bounds = array<i64: 2>, scalar_prefetch = 0 : i64, scratch_operands = 0 : i64, tpu.core_type = #tpu.core_type<tc>, window_params = [{transform_indices = @transform_0, window_bounds = array<i64: 1, 32, 256>}, {pipeline_mode = #tpu.pipeline_mode<synchronous>, transform_indices = @transform_1, window_bounds = array<i64: 2, 32>}, {pipeline_mode = #tpu.pipeline_mode<synchronous>, transform_indices = @transform_2, window_bounds = array<i64: 1, 2>}, {pipeline_mode = #tpu.pipeline_mode<synchronous>, transform_indices = @transform_3, window_bounds = array<i64: 32, 2>}, {pipeline_mode = #tpu.pipeline_mode<synchronous>, transform_indices = @transform_4, window_bounds = array<i64: 1, 32>}, {transform_indices = @transform_5, window_bounds = array<i64: 1, 32, 256>}]} {
    %c0 = arith.constant 0 : index
    %c0_0 = arith.constant 0 : index
    %c0_1 = arith.constant 0 : index
    %0 = vector.load %arg1[%c0, %c0_0, %c0_1] : memref<1x32x256xf32, #tpu.memory_space<vmem>>, vector<1x32x256xf32>
    %cst = arith.constant dense<0.000000e+00> : vector<1x32xf32>
    %1 = vector.multi_reduction <add>, %0, %cst [2] : vector<1x32x256xf32> to vector<1x32xf32>
    %cst_2 = arith.constant 3.906250e-03 : f32
    %2 = vector.broadcast %cst_2 : f32 to vector<1x32xf32>
    %3 = arith.mulf %1, %2 : vector<1x32xf32>
    %4 = vector.shape_cast %3 : vector<1x32xf32> to vector<1x1x32xf32>
    %c0_3 = arith.constant 0 : index
    %c0_4 = arith.constant 0 : index
    %5 = vector.load %arg2[%c0_3, %c0_4] : memref<2x32xf32, #tpu.memory_space<vmem>>, vector<2x32xf32>
    %6 = vector.shape_cast %5 : vector<2x32xf32> to vector<1x2x32xf32>
    %7 = vector.broadcast %4 : vector<1x1x32xf32> to vector<1x2x32xf32>
    %8 = arith.mulf %7, %6 : vector<1x2x32xf32>
    %cst_5 = arith.constant dense<0.000000e+00> : vector<1x2xf32>
    %9 = vector.multi_reduction <add>, %8, %cst_5 [2] : vector<1x2x32xf32> to vector<1x2xf32>
    %c0_6 = arith.constant 0 : index
    %c0_7 = arith.constant 0 : index
    %10 = vector.load %arg3[%c0_6, %c0_7] : memref<1x2xf32, #tpu.memory_space<vmem>>, vector<1x2xf32>
    %11 = arith.addf %9, %10 : vector<1x2xf32>
    %cst_8 = arith.constant 0.000000e+00 : f32
    %12 = vector.broadcast %cst_8 : f32 to vector<1x2xf32>
    %13 = arith.maximumf %11, %12 : vector<1x2xf32>
    %14 = vector.shape_cast %13 : vector<1x2xf32> to vector<1x1x2xf32>
    %c0_9 = arith.constant 0 : index
    %c0_10 = arith.constant 0 : index
    %15 = vector.load %arg4[%c0_9, %c0_10] : memref<32x2xf32, #tpu.memory_space<vmem>>, vector<32x2xf32>
    %16 = vector.shape_cast %15 : vector<32x2xf32> to vector<1x32x2xf32>
    %17 = vector.broadcast %14 : vector<1x1x2xf32> to vector<1x32x2xf32>
    %18 = arith.mulf %17, %16 : vector<1x32x2xf32>
    %cst_11 = arith.constant dense<0.000000e+00> : vector<1x32xf32>
    %19 = vector.multi_reduction <add>, %18, %cst_11 [2] : vector<1x32x2xf32> to vector<1x32xf32>
    %c0_12 = arith.constant 0 : index
    %c0_13 = arith.constant 0 : index
    %20 = vector.load %arg5[%c0_12, %c0_13] : memref<1x32xf32, #tpu.memory_space<vmem>>, vector<1x32xf32>
    %21 = arith.addf %19, %20 : vector<1x32xf32>
    %22 = arith.negf %21 : vector<1x32xf32>
    %23 = math.exp %22 : vector<1x32xf32>
    %cst_14 = arith.constant 1.000000e+00 : f32
    %24 = vector.broadcast %cst_14 : f32 to vector<1x32xf32>
    %25 = arith.addf %24, %23 : vector<1x32xf32>
    %26 = arith.divf %24, %25 : vector<1x32xf32>
    %27 = vector.shape_cast %26 : vector<1x32xf32> to vector<1x32x1xf32>
    %c0_15 = arith.constant 0 : index
    %c0_16 = arith.constant 0 : index
    %c0_17 = arith.constant 0 : index
    %28 = vector.load %arg1[%c0_15, %c0_16, %c0_17] : memref<1x32x256xf32, #tpu.memory_space<vmem>>, vector<1x32x256xf32>
    %29 = vector.broadcast %27 : vector<1x32x1xf32> to vector<1x32x256xf32>
    %30 = arith.mulf %28, %29 : vector<1x32x256xf32>
    %c0_18 = arith.constant 0 : index
    %c0_19 = arith.constant 0 : index
    %c0_20 = arith.constant 0 : index
    %31 = vector.load %arg6[%c0_18, %c0_19, %c0_20] : memref<1x32x256xf32, #tpu.memory_space<vmem>>, vector<1x32x256xf32>
    tpu.vector_store %arg6[%c0_18, %c0_19, %c0_20], %30 {strides = array<i32>} : memref<1x32x256xf32, #tpu.memory_space<vmem>>, vector<1x32x256xf32>,
    return
  }
  func.func @transform_0(%arg0: i32) -> (i32, i32, i32) {
    %c0_i32 = arith.constant 0 : i32
    %c0_i32_0 = arith.constant 0 : i32
    %c0_i32_1 = arith.constant 0 : i32
    return %arg0, %c0_i32, %c0_i32_0 : i32, i32, i32
  }
  func.func @transform_1(%arg0: i32) -> (i32, i32) {
    %c0_i32 = arith.constant 0 : i32
    %c0_i32_0 = arith.constant 0 : i32
    %c0_i32_1 = arith.constant 0 : i32
    return %c0_i32, %c0_i32_0 : i32, i32
  }
  func.func @transform_2(%arg0: i32) -> (i32, i32) {
    %c0_i32 = arith.constant 0 : i32
    %c0_i32_0 = arith.constant 0 : i32
    %c0_i32_1 = arith.constant 0 : i32
    return %c0_i32, %c0_i32_0 : i32, i32
  }
  func.func @transform_3(%arg0: i32) -> (i32, i32) {
    %c0_i32 = arith.constant 0 : i32
    %c0_i32_0 = arith.constant 0 : i32
    %c0_i32_1 = arith.constant 0 : i32
    return %c0_i32, %c0_i32_0 : i32, i32
  }
  func.func @transform_4(%arg0: i32) -> (i32, i32) {
    %c0_i32 = arith.constant 0 : i32
    %c0_i32_0 = arith.constant 0 : i32
    %c0_i32_1 = arith.constant 0 : i32
    return %c0_i32, %c0_i32_0 : i32, i32
  }
  func.func @transform_5(%arg0: i32) -> (i32, i32, i32) {
    %c0_i32 = arith.constant 0 : i32
    %c0_i32_0 = arith.constant 0 : i32
    %c0_i32_1 = arith.constant 0 : i32
    return %arg0, %c0_i32, %c0_i32_0 : i32, i32, i32
  }
}

</mosaic_0001>

<bundles_post_ra>
// kernel: tpu_custom_call.1
= control target key start
LH: loop header
LB: loop body
LE: loop exit
PB: predicated region body
PF: predicated region fallthrough
CT: control target
= control target key end

     0   :  { %10 = vsyncpa [#allocation3], 0  ;;  %s1807_s0 = inlined_call_operand.hbm [shape: f32[2,32,256], index: 0, kind: input, shape index: {}]   ;;  %s1808_s1 = inlined_call_operand.vmem [shape: f32[2,32], index: 1, kind: input, shape index: {}]   ;;  %s1809_s2 = inlined_call_operand.vmem [shape: f32[1,2], index: 2, kind: input, shape index: {}]   ;;  %s1810_s3 = inlined_call_operand.vmem [shape: f32[32,2], index: 3, kind: input, shape index: {}]   ;;  %s1811_s4 = inlined_call_operand.vmem [shape: f32[1,32], index: 4, kind: input, shape index: {}]   ;;  %s1812_s5 = inlined_call_operand.hbm [shape: f32[2,32,256], index: 5, kind: output, shape index: {}]  }
   0x1   :  { %12 = vsyncpa [#allocation3 + $0x1], 0 }
   0x2   :  { %13 = vsyncpa [#allocation4], 0 }
   0x3   :  { %15 = vsyncpa [#allocation4 + $0x1], 0  ;;  %s1421_s18 = smov 0   ;;  %s1423_s19 = smov 0  }
   0x4   :  { %s1425_s20 = smov 0   ;;  %s1427_s21 = smov 0  }
   0x5 LB: > { %s1442_s22 = sadd.s32 4294967295, %s1382_s21   ;;  %s1199_s23 = sadd.s32 4294967294, %s1382_s21   ;;  %s1382_s21 = sphi %s1427_s21, %s1827_s21   ;;  %s1378_s20 = sphi %s1425_s20, %s1826_s20   ;;  %s1374_s19 = sphi %s1423_s19, %s1825_s19   ;;  %s1370_s18 = sphi %s1421_s18, %s1824_s18  }
   0x6   : > { %s1446_s24 = sadd.s32 1, %s1382_s21   ;;  %s28_s25 = sadd.s32 1, %s1378_s20 }
   0x7   : > { %s25_s26 = ssub.s32 %s1382_s21, %s1446_s24  ;;  %p35_p0 = scmp.ne.s32.totalorder %s1378_s20, %s1374_s19 }
   0x8   : > { %p26_p1 = scmp.eq.s32.totalorder %s25_s26, 0  ;;  %p36_p2 = scmp.eq.s32.totalorder %s1382_s21, 0 }
   0x9   : > { %p41_p3 = scmp.ne.s32.totalorder %s1374_s19, %s1370_s18  ;;  %p42_p4 = scmp.eq.s32.totalorder %s1442_s22, 0 }
   0xa   : > { %s1458_s27 = scalar_select %p26_p1, %s1378_s20, %s28_s25  }
   0xb   : > { %p1460_p5 = por %p36_p2, %p35_p0  ;;  %p1464_p6 = por %p42_p4, %p41_p3 }
   0xc   : > { %p149_p7 = scmp.eq.s32.totalorder %s1442_s22, 1  ;;  %p155_p8 = scmp.eq.s32.totalorder %s1199_s23, 1 }
   0xd   : > { %s1816_s29 = scalar_select %p1464_p6, 1, 0 }
   0xe   : > { %p1233_p10 = scmp.lt.s32.totalorder %s1382_s21, 2  ;;  %p1471_p11 = por %p149_p7, %p35_p0 }
   0xf   : > { %p1475_p12 = por %p155_p8, %p41_p3  ;;  %s187_s7 = sand.u32 1, %s1378_s20  }
  0x10   : > { %s1817_s30 = scalar_select %p1471_p11, 1, 0 }
  0x11   : > { %s1818_s6 = scalar_select %p1475_p12, 1, 0 }
  0x12   : > { %s1219_s8 = sshll.u32 %s1382_s21, 10  ;;  %s1202_s9 = sshll.u32 %s187_s7, 6 }
  0x13   : > { %s1484_s12 = scalar_lea.hbm %s1807_s0, %s1219_s8  ;;  %s191_s13 = scalar_lea.vmem [#allocation2], %s1202_s9 }
  0x14   : > { %s198_s14 = sshll.u32 %s191_s13, 4  ;;  %p1488_p13 = pnand %p1233_p10, %p1460_p5  ;;  %s1492_s14 = int_to_ptr.vmem [resolvable:$true] %s198_s14 }
  0x15   : > { %s1494_s16 = scalar_lea.sflag [#allocation3], %s187_s7  ;;  %s1290_s17 = scalar_lea.hbm %s1484_s12, 1024 }
  0x16   : > { %p1291_p0 = scmp.ne.s32.totalorder %s1484_s12, %s1290_s17  ;;  %p1292_p1 = pneg %p1488_p13 }
  0x17   : > { %s1295_s26 = scalar_lea.hbm %s1807_s0, 2048  ;;  %p1296_p4 = scmp.lt.s32.totalorder %s1484_s12, %s1807_s0 }
  0x18   : > { %p1293_p2 = pnand %p1292_p1, %p1291_p0  ;;  %p1297_p5 = scmp.lt.s32.totalorder %s1295_s26, %s1290_s17 }
  0x1a   : > { %p1294_p3 = pneg %p1293_p2  ;;  %p1298_p7 = por %p1297_p5, %p1296_p4 }
  0x1c   : > { %p1299_p8 = pnand %p1298_p7, %p1294_p3 }
  0x1e   : > { %1302 = shalt.err (!%p1299_p8)
}
  0x1f   : > { %s1303_s7 = scalar_lea.vmem %s1492_s14, 1024  ;;  %s1384_s9 = smov [#allocation2]  }
  0x20   : > { %p1304_p10 = scmp.ne.s32.totalorder %s1492_s14, %s1303_s7  ;;  %s1308_s10 = sshll.u32 %s1384_s9, 4  ;;  %s1309_s10 = int_to_ptr.vmem [resolvable:$false] %s1308_s10 }
  0x21   : > { %s1310_s11 = scalar_lea.vmem %s1309_s10, 2048  ;;  %p1311_p2 = scmp.lt.s32.totalorder %s1492_s14, %s1309_s10 }
  0x22   : > { %p1306_p9 = pnand %p1304_p10, %p1292_p1  ;;  %p1312_p12 = scmp.lt.s32.totalorder %s1310_s11, %s1303_s7 }
  0x24   : > { %p1307_p0 = pneg %p1306_p9  ;;  %p1313_p11 = por %p1312_p12, %p1311_p2 }
  0x26   : > { %p1314_p6 = pnand %p1313_p11, %p1307_p0 }
  0x28   : > { %1317 = shalt.err (!%p1314_p6)
}
  0x29   : > { %s1385_s13 = smov 256   ;;  %s1386_s17 = smov 16  }
  0x2a   : > { %1228 = dma.hbm_to_vmem [thread:$0]  (!%p1488_p13), %s1484_s12, 1024, %s1492_s14, %s1494_s16, %s1385_s13, %s1385_s13, %s1386_s17  }
  0x2b   : > { %p1205_p9 = scmp.ge.s32.totalorder %s1382_s21, 1  ;;  %p206_p1 = scmp.lt.s32.totalorder %s1382_s21, 3 }
  0x2d   : > { %p207_p3 = pnand %p1205_p9, %p206_p1 }
  0x2e   : > { %s1518_s23 = sand.u32 (!%p207_p3), 1, %s1374_s19   ;;  %p1820_p6 = scmp.ne.s32.totalorder (!%p207_p3), %s1816_s29, 0 }
  0x2f   : > { %210 = sbr.rel (%p207_p3) target bundleno = 998 (0x3e6), region = 40  ;;  %s1206_s25 = sshll.u32 (!%p207_p3), %s1518_s23, 6 }
  0x30   : > { %s213_s26 = scalar_lea.sflag (!%p207_p3), [#allocation3], %s1518_s23  ;;  %s216_s28 = scalar_lea.vmem (!%p207_p3), [#allocation2], %s1206_s25 }
  0x34   : > { %1361 = dma.done.wait (%p1820_p6), %s213_s26, 1024  }
  0x35   : > { %1363 = vsyncadd (%p1820_p6), %s213_s26, 4294966272  ;;  %v1528_v0 = vld [vmem:[%s216_s28 + $0x20] sm:$0xff]  ;;  %v1530_v1 = vld [vmem:[%s216_s28 + $0x28] sm:$0xff]  ;;  %v269_v12 = vlaneseq  ;;  %v1387_v18 = vmov 0   ;;  %vm366_vm0 = vcmask 130112   ;;  %vm373_vm1 = vcmask 195712  }
  0x36   : > { %v1532_v2 = vld [vmem:[%s216_s28] sm:$0xff]  ;;  %v257_v3 = vadd.f32 %v1530_v1, %v1528_v0  ;;  %v1536_v4 = vld [vmem:[%s216_s28 + $0x8] sm:$0xff]  ;;  %v1538_v5 = vld [vmem:[%s216_s28 + $0x30] sm:$0xff]  ;;  %1273 = vset.pattern.permute.xlu1 %v1387_v18  ;;  %1272 = vset.pattern.permute.xlu0 %v1387_v18  ;;  %vm380_vm2 = vcmask 261312   ;;  %vm401_vm3 = vcmask 1041409   ;;  %vm404_vm4 = vcmask 254976  }
  0x37   : > { %v1540_v6 = vld [vmem:[%s216_s28 + $0x38] sm:$0xff]  ;;  %v251_v7 = vadd.f32 %v1536_v4, %v1532_v2  ;;  %v1544_v8 = vld [vmem:[%s216_s28 + $0x10] sm:$0xff]  ;;  %v1553_v13 = vshrl.u32 %v269_v12, 7  ;;  %v267_v15 = vld [vmem:[%s1808_s1] sm:$0x3]  ;;  %vm973_vm5 = vcmask 1042434  }
  0x38   : > { %v1546_v9 = vld [vmem:[%s216_s28 + $0x18] sm:$0xff]  ;;  %258 = vadd.xlane.f32.xlu1 %v257_v3  ;;  %v260_v10 = vadd.f32 %v1540_v6, %v1538_v5  ;;  %v1208_v20 = vld [vmem:[%s1809_s2] ss:$0 sm:$0xff]  ;;  %v422_v48 = vld [vmem:[%s1810_s3 + $0x10] sm:$0xff]  ;;  %vm975_vm6 = vcmask 1043459   ;;  %vm977_vm7 = vcmask 1044484  }
  0x39   : > { %252 = vadd.xlane.f32.xlu0 %v251_v7  ;;  %v254_v11 = vadd.f32 %v1546_v9, %v1544_v8  ;;  %v1556_v14 = vsub.s32 0, %v1553_v13  ;;  %v1563_v17 = vsub.s32 1, %v1553_v13  ;;  %v444_v40 = vsub.s32 2, %v1553_v13  ;;  %v420_v42 = vld [vmem:[%s1810_s3] sm:$0xff]  ;;  %v421_v55 = vld [vmem:[%s1810_s3 + $0x8] sm:$0xff]  ;;  %s242_s29 = scalar_lea.vmem [#allocation5], %s1206_s25 }
  0x3a   : > { %v451_v46 = vsub.s32 3, %v1553_v13  ;;  %v458_v51 = vsub.s32 4, %v1553_v13  ;;  %v465_v57 = vsub.s32 5, %v1553_v13  ;;  %v472_v62 = vsub.s32 6, %v1553_v13  ;;  %s1126_s12 = sshll.u32 %s242_s29, 4  ;;  %s1220_s14 = sshll.u32 %s1442_s22, 10  ;;  %s1755_s12 = int_to_ptr.vmem [resolvable:$true] %s1126_s12 }
  0x3b   : > { %v272_v16 = vrot.slane %v267_v15, %v1556_v14  ;;  %v291_v19 = vrot.slane %v267_v15, %v1563_v17  ;;  %v445_v45 = vrot.slane %v420_v42, %v444_v40  ;;  %v431_v52 = vrot.slane %v420_v42, %v1556_v14  ;;  %s1762_s16 = scalar_lea.hbm %s1812_s5, %s1220_s14  ;;  %s1113_s22 = scalar_lea.sflag [#allocation4], %s1518_s23 }
  0x3c   : > { %261 = vadd.xlane.f32.xlu1 %v260_v10  ;;  %v564_v50 = vrot.slane %v422_v48, %v451_v46  ;;  %v459_v53 = vrot.slane %v420_v42, %v458_v51  ;;  %v438_v54 = vrot.slane %v420_v42, %v1563_v17  ;;  %v571_v56 = vrot.slane %v422_v48, %v458_v51  ;;  %v423_v10 = vld [vmem:[%s1810_s3 + $0x18] sm:$0xff]  ;;  %s1318_s8 = scalar_lea.vmem %s1755_s12, 1024  ;;  %p1821_p12 = scmp.ne.s32.totalorder %s1817_s30, 0 }
  0x3d   : > { %255 = vadd.xlane.f32.xlu0 %v254_v11  ;;  %v487_v58 = vrot.slane %v421_v55, %v1556_v14  ;;  %v466_v59 = vrot.slane %v420_v42, %v465_v57  ;;  %v494_v60 = vrot.slane %v421_v55, %v1563_v17  ;;  %v578_v61 = vrot.slane %v422_v48, %v465_v57  ;;  %p1319_p11 = scmp.ne.s32.totalorder %s1755_s12, %s1318_s8  ;;  %s1388_s7 = smov [#allocation5]  }
  0x3e   : > { %v543_v63 = vrot.slane %v422_v48, %v1556_v14  ;;  %v473_v3 = vrot.slane %v420_v42, %v472_v62  ;;  %v550_v7 = vrot.slane %v422_v48, %v1563_v17  ;;  %v585_v11 = vrot.slane %v422_v48, %v472_v62  ;;  %s1322_s9 = sshll.u32 %s1388_s7, 4  ;;  %s1323_s9 = int_to_ptr.vmem [resolvable:$false] %s1322_s9 }
  0x3f   : > { %v479_v15 = vsub.s32 7, %v1553_v13  ;;  %vm979_vm8 = vcmask 1045509   ;;  %vm981_vm9 = vcmask 1046534   ;;  %vm983_vm10 = vcmask 1047559   ;;  %p1320_p13 = pnand %p1319_p11, %p1821_p12  ;;  %s1324_s10 = scalar_lea.vmem %s1323_s9, 2048 }
  0x40   : > { %vm1010_vm11 = vcmask 15360   ;;  %p1325_p5 = scmp.lt.s32.totalorder %s1755_s12, %s1323_s9  ;;  %p1326_p7 = scmp.lt.s32.totalorder %s1324_s10, %s1318_s8 }
  0x41   : > { %v480_v18 = vrot.slane %v420_v42, %v479_v15  ;;  %p1321_p4 = pneg %p1320_p13 }
  0x42   : > { %p1327_p8 = por %p1326_p7, %p1325_p5 }
  0x44   : > { %p1328_p10 = pnand %p1327_p8, %p1321_p4 }
  0x4d   : > { %278 = vbcast.lane.b32.xlu1 %v272_v16, 264 }
  0x51   : > { %293 = vbcast.lane.b32.xlu1 %v291_v19, 256 }
  0x53   : > { %274 = vbcast.lane.b32.xlu0 %v272_v16, 256 }
  0x55   : > { %297 = vbcast.lane.b32.xlu1 %v291_v19, 264 }
  0x57   : > { %282 = vbcast.lane.b32.xlu0 %v272_v16, 272 }
  0x59   : > { %301 = vbcast.lane.b32.xlu1 %v291_v19, 272 }
  0x5b   : > { %286 = vbcast.lane.b32.xlu0 %v272_v16, 280  ;;  %v599_v16 = vrot.slane %v423_v10, %v1556_v14  ;;  %v620_v14 = vrot.slane %v423_v10, %v451_v46 }
  0x5d   : > { %305 = vbcast.lane.b32.xlu1 %v291_v19, 280  ;;  %v606_v19 = vrot.slane %v423_v10, %v1563_v17  ;;  %v522_v17 = vrot.slane %v421_v55, %v465_v57 }
  0x5f   : > { %415 = vbcast.lane.b32.xlu0 %v1208_v20, 256  ;;  %v592_v20 = vrot.slane %v422_v48, %v479_v15 }
  0xc1   : > { %v259_v21 = vpop.xlane.xlu1 %258 }
  0xc2   : > { %v253_v22 = vpop.xlane.xlu0 %252  ;;  %v265_v34 = vmul.f32 0.00390625, %v259_v21  ;;  %v501_v21 = vrot.slane %v421_v55, %v444_v40 }
  0xc3   : > { %v263_v26 = vmul.f32 0.00390625, %v253_v22  ;;  %v557_v22 = vrot.slane %v422_v48, %v444_v40 }
  0xc5   : > { %v262_v23 = vpop.xlane.xlu1 %261 }
  0xc6   : > { %v256_v24 = vpop.xlane.xlu0 %255  ;;  %v266_v39 = vmul.f32 0.00390625, %v262_v23  ;;  %v613_v23 = vrot.slane %v423_v10, %v444_v40 }
  0xc7   : > { %v264_v25 = vmul.f32 0.00390625, %v256_v24  ;;  %v452_v24 = vrot.slane %v420_v42, %v451_v46 }
  0xc9   : > { %v279_v27 = vpop.permute.xlu1 %278 }
  0xca   : > { %v316_v28 = vmul.f32 %v279_v27, %v264_v25  ;;  %v275_v29 = vpop.permute.xlu0 %274  ;;  %v627_v27 = vrot.slane %v423_v10, %v458_v51 }
  0xcb   : > { %v315_v30 = vmul.f32 %v275_v29, %v263_v26  ;;  %v529_v29 = vrot.slane %v421_v55, %v472_v62 }
  0xcc   : > { %335 = vperm.xlu1 %1273, %v316_v28   ;;  %v634_v28 = vrot.slane %v423_v10, %v465_v57 }
  0xcd   : > { %332 = vperm.xlu0 %1272, %v315_v30   ;;  %v294_v31 = vpop.permute.xlu1 %293  ;;  %v641_v30 = vrot.slane %v423_v10, %v472_v62 }
  0xce   : > { %v319_v32 = vmul.f32 %v294_v31, %v263_v26  ;;  %v283_v33 = vpop.permute.xlu0 %282  ;;  %v515_v26 = vrot.slane %v421_v55, %v458_v51  ;;  %v536_v31 = vrot.slane %v421_v55, %v479_v15 }
  0xcf   : > { %v317_v36 = vmul.f32 %v283_v33, %v265_v34 }
  0xd0   : > { %344 = vperm.xlu1 %1273, %v319_v32   ;;  %v648_v32 = vrot.slane %v423_v10, %v479_v15 }
  0xd1   : > { %v298_v35 = vpop.permute.xlu1 %297 }
  0xd2   : > { %v320_v37 = vmul.f32 %v298_v35, %v264_v25  ;;  %v287_v38 = vpop.permute.xlu0 %286  ;;  %v508_v25 = vrot.slane %v421_v55, %v451_v46  ;;  %v356_v35 = vand.u32 127, %v269_v12 }
  0xd3   : > { %v318_v43 = vmul.f32 %v287_v38, %v266_v39 }
  0xd4   : > { %347 = vperm.xlu0 %1272, %v320_v37   ;;  %338 = vperm.xlu1 %1273, %v317_v36   ;;  %v361_v38 = vadd.s32 4294967288, %v356_v35  ;;  %v375_v40 = vadd.s32 4294967272, %v356_v35 }
  0xd5   : > { %v302_v41 = vpop.permute.xlu1 %301 }
  0xd6   : > { %v321_v44 = vmul.f32 %v302_v41, %v265_v34  ;;  %v416_v33 = vpop.permute.xlu0 %415  ;;  %v378_v46 = vsub.s32 %v375_v40, %v1553_v13 }
  0xd8   : > { %350 = vperm.xlu0 %1272, %v321_v44   ;;  %341 = vperm.xlu1 %1273, %v318_v43   ;;  %v1597_v43 = vsub.s32 %v356_v35, %v1553_v13  ;;  %v364_v44 = vsub.s32 %v361_v38, %v1553_v13 }
  0xd9   : > { %v306_v47 = vpop.permute.xlu1 %305 }
  0xda   : > { %v322_v49 = vmul.f32 %v306_v47, %v266_v39  ;;  %v368_v39 = vadd.s32 4294967280, %v356_v35 }
  0xdc   : > { %353 = vperm.xlu0 %1272, %v322_v49   ;;  %447 = vbcast.lane.b32.xlu1 %v445_v45, 256  ;;  %v371_v45 = vsub.s32 %v368_v39, %v1553_v13 }
  0xe0   : > { %566 = vbcast.lane.b32.xlu1 %v564_v50, 256  ;;  %433 = vbcast.lane.b32.xlu0 %v431_v52, 256 }
  0xe4   : > { %461 = vbcast.lane.b32.xlu1 %v459_v53, 256  ;;  %440 = vbcast.lane.b32.xlu0 %v438_v54, 256 }
  0xe8   : > { %573 = vbcast.lane.b32.xlu1 %v571_v56, 256  ;;  %489 = vbcast.lane.b32.xlu0 %v487_v58, 256 }
  0xec   : > { %468 = vbcast.lane.b32.xlu1 %v466_v59, 256  ;;  %496 = vbcast.lane.b32.xlu0 %v494_v60, 256 }
  0xf0   : > { %580 = vbcast.lane.b32.xlu1 %v578_v61, 256  ;;  %545 = vbcast.lane.b32.xlu0 %v543_v63, 256 }
  0xf4   : > { %475 = vbcast.lane.b32.xlu1 %v473_v3, 256  ;;  %552 = vbcast.lane.b32.xlu0 %v550_v7, 256 }
  0xf8   : > { %587 = vbcast.lane.b32.xlu1 %v585_v11, 256  ;;  %601 = vbcast.lane.b32.xlu0 %v599_v16, 256 }
  0xfc   : > { %482 = vbcast.lane.b32.xlu1 %v480_v18, 256  ;;  %608 = vbcast.lane.b32.xlu0 %v606_v19, 256 }
 0x100   : > { %594 = vbcast.lane.b32.xlu1 %v592_v20, 256  ;;  %503 = vbcast.lane.b32.xlu0 %v501_v21, 256 }
 0x104   : > { %559 = vbcast.lane.b32.xlu0 %v557_v22, 256 }
 0x108   : > { %615 = vbcast.lane.b32.xlu0 %v613_v23, 256 }
 0x10c   : > { %454 = vbcast.lane.b32.xlu0 %v452_v24, 256 }
 0x110   : > { %510 = vbcast.lane.b32.xlu0 %v508_v25, 256 }
 0x114   : > { %622 = vbcast.lane.b32.xlu0 %v620_v14, 256 }
 0x118   : > { %517 = vbcast.lane.b32.xlu0 %v515_v26, 256 }
 0x11c   : > { %629 = vbcast.lane.b32.xlu0 %v627_v27, 256 }
 0x120   : > { %524 = vbcast.lane.b32.xlu0 %v522_v17, 256 }
 0x124   : > { %636 = vbcast.lane.b32.xlu0 %v634_v28, 256 }
 0x128   : > { %531 = vbcast.lane.b32.xlu0 %v529_v29, 256 }
 0x12c   : > { %643 = vbcast.lane.b32.xlu0 %v641_v30, 256 }
 0x130   : > { %538 = vbcast.lane.b32.xlu0 %v536_v31, 256 }
 0x134   : > { %650 = vbcast.lane.b32.xlu0 %v648_v32, 256 }
 0x147   : > { %v336_v34 = vpop.permute.xlu1 %335 }
 0x148   : > { %v333_v36 = vpop.permute.xlu0 %332  ;;  %v365_v49 = vrot.slane %v336_v34, %v364_v44 }
 0x149   : > { %v360_v12 = vrot.slane %v333_v36, %v1597_v43 }
 0x14b   : > { %v345_v37 = vpop.permute.xlu1 %344  ;;  %v367_v56 = vsel %vm366_vm0, %v365_v49, %v360_v12 }
 0x14c   : > { %v385_v53 = vrot.slane %v345_v37, %v1597_v43 }
 0x14f   : > { %v339_v41 = vpop.permute.xlu1 %338  ;;  %v348_v42 = vpop.permute.xlu0 %347 }
 0x150   : > { %v389_v50 = vrot.slane %v348_v42, %v364_v44  ;;  %v372_v51 = vrot.slane %v339_v41, %v371_v45 }
 0x152   : > { %v390_v57 = vsel %vm366_vm0, %v389_v50, %v385_v53  ;;  %v374_v13 = vsel %vm373_vm1, %v372_v51, %v367_v56 }
 0x153   : > { %v342_v47 = vpop.permute.xlu1 %341  ;;  %v351_v48 = vpop.permute.xlu0 %350 }
 0x154   : > { %v394_v52 = vrot.slane %v351_v48, %v371_v45  ;;  %v379_v54 = vrot.slane %v342_v47, %v378_v46 }
 0x156   : > { %v395_v59 = vsel %vm373_vm1, %v394_v52, %v390_v57  ;;  %v381_v60 = vsel %vm380_vm2, %v379_v54, %v374_v13 }
 0x157   : > { %v354_v55 = vpop.permute.xlu0 %353  ;;  %v448_v7 = vpop.permute.xlu1 %447 }
 0x158   : > { %v399_v58 = vrot.slane %v354_v55, %v378_v46 }
 0x15a   : > { %v400_v61 = vsel %vm380_vm2, %v399_v58, %v395_v59 }
 0x15b   : > { %v402_v62 = vsel %vm401_vm3, %v400_v61, %v381_v60  ;;  %v434_v3 = vpop.permute.xlu0 %433  ;;  %v567_v11 = vpop.permute.xlu1 %566 }
 0x15c   : > { %v405_v63 = vsel %vm404_vm4, %v402_v62, 0.0 }
 0x15d   : > { %406 = vadd.xlane.f32.xlu1 %v405_v63 }
 0x15f   : > { %v441_v10 = vpop.permute.xlu0 %440  ;;  %v462_v16 = vpop.permute.xlu1 %461 }
 0x163   : > { %v490_v15 = vpop.permute.xlu0 %489  ;;  %v574_v19 = vpop.permute.xlu1 %573 }
 0x167   : > { %v497_v18 = vpop.permute.xlu0 %496  ;;  %v1605_v21 = vpop.permute.xlu1 %468 }
 0x16b   : > { %v546_v20 = vpop.permute.xlu0 %545  ;;  %v1607_v23 = vpop.permute.xlu1 %580 }
 0x16f   : > { %v553_v22 = vpop.permute.xlu0 %552  ;;  %v1609_v25 = vpop.permute.xlu1 %475 }
 0x173   : > { %v602_v24 = vpop.permute.xlu0 %601  ;;  %v1611_v26 = vpop.permute.xlu1 %587 }
 0x177   : > { %v609_v14 = vpop.permute.xlu0 %608  ;;  %v1613_v17 = vpop.permute.xlu1 %482 }
 0x17b   : > { %v504_v27 = vpop.permute.xlu0 %503  ;;  %v1615_v29 = vpop.permute.xlu1 %594 }
 0x17f   : > { %v560_v28 = vpop.permute.xlu0 %559 }
 0x183   : > { %v616_v30 = vpop.permute.xlu0 %615 }
 0x187   : > { %v455_v34 = vpop.permute.xlu0 %454 }
 0x18b   : > { %v511_v38 = vpop.permute.xlu0 %510 }
 0x18f   : > { %v623_v42 = vpop.permute.xlu0 %622 }
 0x193   : > { %v518_v46 = vpop.permute.xlu0 %517 }
 0x197   : > { %v630_v50 = vpop.permute.xlu0 %629 }
 0x19b   : > { %v525_v53 = vpop.permute.xlu0 %524 }
 0x19f   : > { %v637_v58 = vpop.permute.xlu0 %636 }
 0x1a3   : > { %v532_v60 = vpop.permute.xlu0 %531 }
 0x1e6   : > { %v407_v31 = vpop.xlane.xlu1 %406 }
 0x1e7   : > { %v418_v32 = vadd.f32 %v416_v33, %v407_v31 }
 0x1e9   : > { %v1617_v35 = vmax.f32 %v418_v32, 0.0 }
 0x1eb   : > { %v684_v36 = vmul.f32 %v434_v3, %v1617_v35  ;;  %v685_v37 = vmul.f32 %v441_v10, %v1617_v35  ;;  %v692_v39 = vmul.f32 %v490_v15, %v1617_v35  ;;  %v693_v40 = vmul.f32 %v497_v18, %v1617_v35 }
 0x1ec   : > { %v700_v41 = vmul.f32 %v546_v20, %v1617_v35  ;;  %v701_v33 = vmul.f32 %v553_v22, %v1617_v35  ;;  %v708_v44 = vmul.f32 %v602_v24, %v1617_v35  ;;  %v709_v45 = vmul.f32 %v609_v14, %v1617_v35  ;;  %v1660_v24 = vld [vmem:[%s1811_s4] ss:$0 sm:$0xff] }
 0x1ed   : > { %749 = vperm.xlu1 %1273, %v684_v36   ;;  %752 = vperm.xlu0 %1272, %v685_v37   ;;  %v686_v47 = vmul.f32 %v448_v7, %v1617_v35  ;;  %v694_v48 = vmul.f32 %v504_v27, %v1617_v35  ;;  %v702_v49 = vmul.f32 %v560_v28, %v1617_v35  ;;  %v644_v7 = vpop.permute.xlu0 %643 }
 0x1ee   : > { %v710_v12 = vmul.f32 %v616_v30, %v1617_v35  ;;  %v687_v51 = vmul.f32 %v455_v34, %v1617_v35  ;;  %v695_v52 = vmul.f32 %v511_v38, %v1617_v35  ;;  %v703_v54 = vmul.f32 %v567_v11, %v1617_v35 }
 0x1ef   : > { %v711_v55 = vmul.f32 %v623_v42, %v1617_v35  ;;  %v688_v56 = vmul.f32 %v462_v16, %v1617_v35  ;;  %v696_v57 = vmul.f32 %v518_v46, %v1617_v35  ;;  %v704_v13 = vmul.f32 %v574_v19, %v1617_v35 }
 0x1f0   : > { %v712_v59 = vmul.f32 %v630_v50, %v1617_v35  ;;  %v689_v61 = vmul.f32 %v1605_v21, %v1617_v35  ;;  %v697_v62 = vmul.f32 %v525_v53, %v1617_v35  ;;  %v705_v63 = vmul.f32 %v1607_v23, %v1617_v35 }
 0x1f1   : > { %773 = vperm.xlu1 %1273, %v692_v39   ;;  %776 = vperm.xlu0 %1272, %v693_v40   ;;  %v713_v3 = vmul.f32 %v637_v58, %v1617_v35  ;;  %v690_v10 = vmul.f32 %v1609_v25, %v1617_v35  ;;  %v698_v11 = vmul.f32 %v532_v60, %v1617_v35  ;;  %v539_v16 = vpop.permute.xlu0 %538 }
 0x1f2   : > { %v706_v15 = vmul.f32 %v1611_v26, %v1617_v35  ;;  %v714_v18 = vmul.f32 %v644_v7, %v1617_v35  ;;  %v691_v19 = vmul.f32 %v1613_v17, %v1617_v35  ;;  %v699_v20 = vmul.f32 %v539_v16, %v1617_v35 }
 0x1f3   : > { %v707_v22 = vmul.f32 %v1615_v29, %v1617_v35 }
 0x1f5   : > { %797 = vperm.xlu1 %1273, %v700_v41   ;;  %800 = vperm.xlu0 %1272, %v701_v33   ;;  %v651_v21 = vpop.permute.xlu0 %650 }
 0x1f6   : > { %v715_v23 = vmul.f32 %v651_v21, %v1617_v35 }
 0x1f9   : > { %821 = vperm.xlu1 %1273, %v708_v44   ;;  %824 = vperm.xlu0 %1272, %v709_v45  }
 0x1fd   : > { %755 = vperm.xlu1 %1273, %v686_v47   ;;  %779 = vperm.xlu0 %1272, %v694_v48  }
 0x201   : > { %803 = vperm.xlu1 %1273, %v702_v49   ;;  %827 = vperm.xlu0 %1272, %v710_v12  }
 0x205   : > { %758 = vperm.xlu1 %1273, %v687_v51   ;;  %782 = vperm.xlu0 %1272, %v695_v52  }
 0x209   : > { %806 = vperm.xlu1 %1273, %v703_v54   ;;  %830 = vperm.xlu0 %1272, %v711_v55  }
 0x20d   : > { %761 = vperm.xlu1 %1273, %v688_v56   ;;  %785 = vperm.xlu0 %1272, %v696_v57  }
 0x211   : > { %809 = vperm.xlu1 %1273, %v704_v13   ;;  %833 = vperm.xlu0 %1272, %v712_v59  }
 0x215   : > { %764 = vperm.xlu1 %1273, %v689_v61   ;;  %788 = vperm.xlu0 %1272, %v697_v62  }
 0x219   : > { %812 = vperm.xlu1 %1273, %v705_v63   ;;  %836 = vperm.xlu0 %1272, %v713_v3  }
 0x21d   : > { %767 = vperm.xlu1 %1273, %v690_v10   ;;  %791 = vperm.xlu0 %1272, %v698_v11  }
 0x221   : > { %815 = vperm.xlu1 %1273, %v706_v15   ;;  %839 = vperm.xlu0 %1272, %v714_v18  }
 0x225   : > { %770 = vperm.xlu1 %1273, %v691_v19   ;;  %794 = vperm.xlu0 %1272, %v699_v20  }
 0x229   : > { %818 = vperm.xlu1 %1273, %v707_v22   ;;  %842 = vperm.xlu0 %1272, %v715_v23  }
 0x22d   : > { %1034 = vbcast.lane.b32.xlu1 %v1660_v24, 264  ;;  %1030 = vbcast.lane.b32.xlu0 %v1660_v24, 256 }
 0x268   : > { %v750_v25 = vpop.permute.xlu1 %749  ;;  %v753_v14 = vpop.permute.xlu0 %752 }
 0x269   : > { %v847_v48 = vrot.slane %v750_v25, %v1597_v43  ;;  %v851_v49 = vrot.slane %v753_v14, %v1597_v43 }
 0x26b   : > { %v972_v61 = vsel %vm401_vm3, %v851_v49, %v847_v48 }
 0x26c   : > { %v774_v26 = vpop.permute.xlu1 %773  ;;  %v777_v27 = vpop.permute.xlu0 %776 }
 0x26d   : > { %v879_v12 = vrot.slane %v774_v26, %v1597_v43  ;;  %v883_v50 = vrot.slane %v777_v27, %v1597_v43 }
 0x26f   : > { %v985_v62 = vsel %vm401_vm3, %v883_v50, %v879_v12 }
 0x270   : > { %v798_v17 = vpop.permute.xlu1 %797  ;;  %v801_v28 = vpop.permute.xlu0 %800 }
 0x271   : > { %v911_v51 = vrot.slane %v798_v17, %v1597_v43  ;;  %v915_v52 = vrot.slane %v801_v28, %v1597_v43 }
 0x273   : > { %v992_v3 = vsel %vm401_vm3, %v915_v52, %v911_v51 }
 0x274   : > { %v822_v29 = vpop.permute.xlu1 %821  ;;  %v825_v30 = vpop.permute.xlu0 %824 }
 0x275   : > { %v943_v53 = vrot.slane %v822_v29, %v1597_v43  ;;  %v947_v54 = vrot.slane %v825_v30, %v1597_v43 }
 0x277   : > { %v999_v7 = vsel %vm401_vm3, %v947_v54, %v943_v53 }
 0x278   : > { %v756_v31 = vpop.permute.xlu1 %755  ;;  %v780_v32 = vpop.permute.xlu0 %779 }
 0x279   : > { %v855_v56 = vrot.slane %v756_v31, %v1597_v43  ;;  %v887_v57 = vrot.slane %v780_v32, %v1597_v43 }
 0x27b   : > { %v974_v16 = vsel %vm973_vm5, %v855_v56, %v972_v61  ;;  %v986_v18 = vsel %vm973_vm5, %v887_v57, %v985_v62 }
 0x27c   : > { %v804_v34 = vpop.permute.xlu1 %803  ;;  %v828_v35 = vpop.permute.xlu0 %827 }
 0x27d   : > { %v919_v13 = vrot.slane %v804_v34, %v1597_v43  ;;  %v951_v59 = vrot.slane %v828_v35, %v1597_v43 }
 0x27f   : > { %v993_v22 = vsel %vm973_vm5, %v919_v13, %v992_v3  ;;  %v1000_v23 = vsel %vm973_vm5, %v951_v59, %v999_v7 }
 0x280   : > { %v759_v36 = vpop.permute.xlu1 %758  ;;  %v783_v37 = vpop.permute.xlu0 %782 }
 0x281   : > { %v859_v60 = vrot.slane %v759_v36, %v1597_v43  ;;  %v891_v63 = vrot.slane %v783_v37, %v1597_v43 }
 0x283   : > { %v976_v25 = vsel %vm975_vm6, %v859_v60, %v974_v16  ;;  %v987_v26 = vsel %vm975_vm6, %v891_v63, %v986_v18 }
 0x284   : > { %v1664_v38 = vpop.permute.xlu1 %806  ;;  %v1666_v39 = vpop.permute.xlu0 %830 }
 0x285   : > { %v923_v27 = vrot.slane %v1664_v38, %v1597_v43  ;;  %v955_v17 = vrot.slane %v1666_v39, %v1597_v43 }
 0x287   : > { %v1001_v49 = vsel %vm975_vm6, %v955_v17, %v1000_v23 }
 0x288   : > { %v762_v40 = vpop.permute.xlu1 %761  ;;  %v786_v41 = vpop.permute.xlu0 %785 }
 0x289   : > { %v863_v10 = vrot.slane %v762_v40, %v1597_v43  ;;  %v895_v11 = vrot.slane %v786_v41, %v1597_v43 }
 0x28b   : > { %v978_v29 = vsel %vm977_vm7, %v863_v10, %v976_v25  ;;  %v988_v30 = vsel %vm977_vm7, %v895_v11, %v987_v26 }
 0x28c   : > { %v1668_v33 = vpop.permute.xlu1 %809  ;;  %v1670_v42 = vpop.permute.xlu0 %833 }
 0x28d   : > { %v927_v31 = vrot.slane %v1668_v33, %v1597_v43  ;;  %v959_v32 = vrot.slane %v1670_v42, %v1597_v43 }
 0x28f   : > { %v1002_v52 = vsel %vm977_vm7, %v959_v32, %v1001_v49 }
 0x290   : > { %v765_v44 = vpop.permute.xlu1 %764  ;;  %v789_v45 = vpop.permute.xlu0 %788 }
 0x291   : > { %v867_v19 = vrot.slane %v765_v44, %v1597_v43  ;;  %v899_v20 = vrot.slane %v789_v45, %v1597_v43  ;;  %v994_v44 = vsel %vm975_vm6, %v923_v27, %v993_v22 }
 0x292   : > { %v995_v12 = vsel %vm977_vm7, %v927_v31, %v994_v44 }
 0x293   : > { %v980_v35 = vsel %vm979_vm8, %v867_v19, %v978_v29  ;;  %v989_v36 = vsel %vm979_vm8, %v899_v20, %v988_v30 }
 0x294   : > { %v1672_v46 = vpop.permute.xlu1 %812  ;;  %v1674_v47 = vpop.permute.xlu0 %836 }
 0x295   : > { %v931_v37 = vrot.slane %v1672_v46, %v1597_v43  ;;  %v963_v40 = vrot.slane %v1674_v47, %v1597_v43 }
 0x297   : > { %v996_v53 = vsel %vm979_vm8, %v931_v37, %v995_v12  ;;  %v1003_v57 = vsel %vm979_vm8, %v963_v40, %v1002_v52 }
 0x298   : > { %v768_v55 = vpop.permute.xlu1 %767  ;;  %v792_v58 = vpop.permute.xlu0 %791 }
 0x299   : > { %v871_v14 = vrot.slane %v768_v55, %v1597_v43  ;;  %v903_v28 = vrot.slane %v792_v58, %v1597_v43 }
 0x29b   : > { %v982_v42 = vsel %vm981_vm9, %v871_v14, %v980_v35  ;;  %v990_v46 = vsel %vm981_vm9, %v903_v28, %v989_v36 }
 0x29c   : > { %v816_v15 = vpop.permute.xlu1 %815  ;;  %v840_v21 = vpop.permute.xlu0 %839 }
 0x29d   : > { %v935_v41 = vrot.slane %v816_v15, %v1597_v43  ;;  %v967_v45 = vrot.slane %v840_v21, %v1597_v43 }
 0x29f   : > { %v997_v13 = vsel %vm981_vm9, %v935_v41, %v996_v53  ;;  %v1004_v60 = vsel %vm981_vm9, %v967_v45, %v1003_v57 }
 0x2a0   : > { %v771_v34 = vpop.permute.xlu1 %770  ;;  %v795_v39 = vpop.permute.xlu0 %794 }
 0x2a1   : > { %v875_v38 = vrot.slane %v771_v34, %v1597_v43  ;;  %v907_v33 = vrot.slane %v795_v39, %v1597_v43 }
 0x2a3   : > { %v984_v48 = vsel %vm983_vm10, %v875_v38, %v982_v42  ;;  %v991_v51 = vsel %vm983_vm10, %v907_v33, %v990_v46 }
 0x2a4   : > { %v819_v50 = vpop.permute.xlu1 %818  ;;  %v1011_v47 = vsel %vm1010_vm11, %v984_v48, 0.0  ;;  %v843_v55 = vpop.permute.xlu0 %842  ;;  %v1014_v56 = vsel %vm1010_vm11, %v991_v51, 0.0 }
 0x2a5   : > { %v939_v54 = vrot.slane %v819_v50, %v1597_v43  ;;  %1012 = vadd.xlane.f32.xlu1 %v1011_v47  ;;  %v971_v58 = vrot.slane %v843_v55, %v1597_v43  ;;  %1015 = vadd.xlane.f32.xlu0 %v1014_v56 }
 0x2a7   : > { %v998_v59 = vsel %vm983_vm10, %v939_v54, %v997_v13  ;;  %v1005_v62 = vsel %vm983_vm10, %v971_v58, %v1004_v60 }
 0x2a8   : > { %v1017_v61 = vsel %vm1010_vm11, %v998_v59, 0.0  ;;  %v1020_v63 = vsel %vm1010_vm11, %v1005_v62, 0.0  ;;  %v1035_v43 = vpop.permute.xlu1 %1034  ;;  %v1031_v3 = vpop.permute.xlu0 %1030 }
 0x2a9   : > { %1018 = vadd.xlane.f32.xlu0 %v1017_v61  ;;  %1021 = vadd.xlane.f32.xlu1 %v1020_v63 }
 0x2ba   : > { %1038 = vbcast.lane.b32.xlu1 %v1660_v24, 272 }
 0x2bf   : > { %1042 = vbcast.lane.b32.xlu0 %v1660_v24, 280 }
 0x32e   : > { %v1013_v7 = vpop.xlane.xlu1 %1012  ;;  %v1016_v11 = vpop.xlane.xlu0 %1015 }
 0x32f   : > { %v1048_v10 = vadd.f32 %v1031_v3, %v1013_v7  ;;  %v1049_v15 = vadd.f32 %v1035_v43, %v1016_v11 }
 0x331   : > { %v1210_v16 = vmul.f32 -1.442695, %v1048_v10  ;;  %v1211_v18 = vmul.f32 -1.442695, %v1049_v15 }
 0x332   : > { %v1022_v19 = vpop.xlane.xlu1 %1021  ;;  %v1019_v20 = vpop.xlane.xlu0 %1018 }
 0x333   : > { %1274 = vpow2.f32 %v1210_v16 }
 0x334   : > { %1276 = vpow2.f32 %v1211_v18 }
 0x336   : > { %v1039_v21 = vpop.permute.xlu1 %1038  ;;  %v1043_v22 = vpop.permute.xlu0 %1042 }
 0x337   : > { %v1050_v23 = vadd.f32 %v1039_v21, %v1019_v20  ;;  %v1051_v25 = vadd.f32 %v1043_v22, %v1022_v19 }
 0x339   : > { %v1212_v14 = vmul.f32 -1.442695, %v1050_v23  ;;  %v1213_v26 = vmul.f32 -1.442695, %v1051_v25 }
 0x33b   : > { %1278 = vpow2.f32 %v1212_v14 }
 0x33c   : > { %1280 = vpow2.f32 %v1213_v26 }
 0x340   : > { %v1275_v24 = vpop.eup %1274 }
 0x341   : > { %v1277_v27 = vpop.eup %1276  ;;  %v1064_v17 = vadd.f32 1.0, %v1275_v24 }
 0x342   : > { %v1065_v28 = vadd.f32 1.0, %v1277_v27 }
 0x343   : > { %1282 = vrcp.f32 %v1064_v17 }
 0x344   : > { %1284 = vrcp.f32 %v1065_v28 }
 0x348   : > { %v1279_v29 = vpop.eup %1278 }
 0x349   : > { %v1281_v30 = vpop.eup %1280  ;;  %v1066_v31 = vadd.f32 1.0, %v1279_v29 }
 0x34a   : > { %v1067_v32 = vadd.f32 1.0, %v1281_v30 }
 0x34b   : > { %1286 = vrcp.f32 %v1066_v31 }
 0x34c   : > { %1288 = vrcp.f32 %v1067_v32 }
 0x350   : > { %v1283_v34 = vpop.eup %1282 }
 0x351   : > { %v1285_v35 = vpop.eup %1284  ;;  %1078 = vperm.xlu1 %1273, %v1283_v34  }
 0x352   : > { %1083 = vperm.xlu0 %1272, %v1285_v35  }
 0x358   : > { %v1287_v36 = vpop.eup %1286 }
 0x359   : > { %v1289_v37 = vpop.eup %1288  ;;  %1088 = vperm.xlu1 %1273, %v1287_v36  }
 0x35a   : > { %1093 = vperm.xlu0 %1272, %v1289_v37  }
 0x3cc   : > { %v1079_v38 = vpop.permute.xlu1 %1078 }
 0x3cd   : > { %v1096_v39 = vmul.f32 %v1079_v38, %v1532_v2  ;;  %v1097_v40 = vmul.f32 %v1079_v38, %v1536_v4  ;;  %v1084_v41 = vpop.permute.xlu0 %1083 }
 0x3ce   : > { %v1098_v33 = vmul.f32 %v1084_v41, %v1544_v8  ;;  %v1099_v42 = vmul.f32 %v1084_v41, %v1546_v9 }
 0x3cf   : > { %1104 = vst [vmem:[%s242_s29] sm:$0xff] %v1096_v39  ;;  %1105 = vst [vmem:[%s242_s29 + $0x8] sm:$0xff] %v1097_v40 }
 0x3d0   : > { %1106 = vst [vmem:[%s242_s29 + $0x10] sm:$0xff] %v1098_v33  ;;  %1107 = vst [vmem:[%s242_s29 + $0x18] sm:$0xff] %v1099_v42 }
 0x3d4   : > { %v1089_v2 = vpop.permute.xlu1 %1088 }
 0x3d5   : > { %v1100_v4 = vmul.f32 %v1089_v2, %v1528_v0  ;;  %v1101_v8 = vmul.f32 %v1089_v2, %v1530_v1  ;;  %v1094_v9 = vpop.permute.xlu0 %1093 }
 0x3d6   : > { %v1102_v44 = vmul.f32 %v1094_v9, %v1538_v5  ;;  %v1103_v45 = vmul.f32 %v1094_v9, %v1540_v6 }
 0x3d7   : > { %1108 = vst [vmem:[%s242_s29 + $0x20] sm:$0xff] %v1100_v4  ;;  %1109 = vst [vmem:[%s242_s29 + $0x28] sm:$0xff] %v1101_v8 }
 0x3d8   : > { %1110 = vst [vmem:[%s242_s29 + $0x30] sm:$0xff] %v1102_v44  ;;  %1111 = vst [vmem:[%s242_s29 + $0x38] sm:$0xff] %v1103_v45 }
 0x3d9   : > { %1331 = shalt.err (!%p1328_p10)
}
 0x3da   : > { %s1332_s11 = scalar_lea.hbm %s1762_s16, 1024  ;;  %s1336_s26 = scalar_lea.hbm %s1812_s5, 2048 }
 0x3db   : > { %p1333_p0 = scmp.ne.s32.totalorder %s1762_s16, %s1332_s11  ;;  %p1337_p1 = scmp.lt.s32.totalorder %s1762_s16, %s1812_s5 }
 0x3dc   : > { %p1338_p3 = scmp.lt.s32.totalorder %s1336_s26, %s1332_s11 }
 0x3dd   : > { %p1334_p2 = pnand %p1333_p0, %p1821_p12 }
 0x3de   : > { %p1339_p6 = por %p1338_p3, %p1337_p1 }
 0x3df   : > { %p1335_p9 = pneg %p1334_p2 }
 0x3e1   : > { %p1340_p11 = pnand %p1339_p6, %p1335_p9 }
 0x3e3   : > { %1343 = shalt.err (!%p1340_p11)
}
 0x3e4   : > { %s1389_s14 = smov 256   ;;  %s1390_s15 = smov 16  }
 0x3e5   : > { %1223 = dma.vmem_to_hbm [thread:$0]  (%p1821_p12), %s1755_s12, 1024, %s1762_s16, %s1113_s22, %s1389_s14, %s1389_s14, %s1390_s15  }
 0x3e6 PF: > { %s1141_s25 = sand.u32 1, %s1370_s18   ;;  %p1822_p13 = scmp.ne.s32.totalorder %s1818_s6, 0 }
 0x3e7   : > { %p1823_p4 = scmp.ge.s32.totalorder %s1382_s21, 2  ;;  %s1142_s8 = scalar_lea.sflag [#allocation4], %s1141_s25 }
 0x3e9   : > { %p1230_p5 = pnand %p1823_p4, %p1822_p13 }
 0x3eb   : > { %p1231_p7 = pneg %p1230_p5 }
 0x3ed   : > { %1365 = dma.done.wait (%p1231_p7), %s1142_s8, 1024  }
 0x3ee   : > { %1367 = vsyncadd (%p1231_p7), %s1142_s8, 4294966272  ;;  %p18_p8 = scmp.ge.s32.totalorder %s1446_s24, 4   ;;  %s1824_s18 = smov %s1374_s19 }
 0x3ef   : > { %s1825_s19 = smov %s1378_s20  ;;  %s1826_s20 = smov %s1458_s27 }
 0x3f0   : > { %s1827_s21 = smov %s1446_s24  ;;  %20 = sbr.rel (!%p18_p8) target bundleno = 5 (0x5), region = 85 }
 0x3f5   :  { %1147 = vsyncpa [#allocation3], 1 }
 0x3f6   :  { %1149 = vsyncpa [#allocation3 + $0x1], 1 }
 0x3f7   :  { %1150 = vsyncpa [#allocation4], 1 }
 0x3f8   :  { %1152 = vsyncpa [#allocation4 + $0x1], 1 }

</bundles_post_ra>
